<compile_context>
chip_gen: v7x
topology: tpu7x:2x2x1
jax: 0.10.0
libtpu: 0.0.40
codegen_flags: <defaults>
</compile_context>

<pallas_src>
import functools

import jax
import jax.numpy as jnp
from jax.experimental import pallas as pl
from jax.experimental.pallas import tpu as pltpu


def _round_up(x, m):
    return (x + m - 1) // m * m


# ----------------------------------------------------------------------------
# Fused kernel: relu(x@W0+b0) -> relu(.@W1+b1) -> sigmoid(<.,w2> + b2)
#   x, W0, W1 : bf16 (MXU inputs), f32 accumulation
#   biases / W2 / all elementwise math : f32
# ----------------------------------------------------------------------------
def _prior_disc_kernel(x_ref, w0_ref, b0_ref, w1_ref, b1_ref, w2_ref, b2_ref,
                       o_ref):
    h = jnp.dot(x_ref[...], w0_ref[...], preferred_element_type=jnp.float32)
    h = jnp.maximum(h + b0_ref[...], 0.0)
    h = jnp.dot(h.astype(jnp.bfloat16), w1_ref[...],
                preferred_element_type=jnp.float32)
    h = jnp.maximum(h + b1_ref[...], 0.0)
    # Final (H1 -> 1) projection on the VPU/XLU: elementwise multiply against
    # the broadcast weight row, then a lane reduction.  Avoids a 1-column MXU
    # matmul and its masked partial stores.
    z = jnp.sum(h * w2_ref[...], axis=1, keepdims=True) + b2_ref[0]
    # exp on the EUP, approximate reciprocal also on the EUP (free slot).
    o_ref[...] = pl.reciprocal(1.0 + jnp.exp(-z), approx=True)


# ----------------------------------------------------------------------------
# One-time parameter preparation: PyTorch (out, in) f32 -> padded (in, out),
# bf16 matmul weights.  Call once; reuse the result for every forward call.
# ----------------------------------------------------------------------------
def prepare_params(params):
    w0, b0 = params["l0_w"], params["l0_b"]        # (1000, 64), (1000,)
    w1, b1 = params["l1_w"], params["l1_b"]        # (200, 1000), (200,)
    w2, b2 = params["l2_w"], params["l2_b"]        # (1, 200), (1,)

    H0, H1 = w0.shape[0], w1.shape[0]
    H0p, H1p = _round_up(H0, 128), _round_up(H1, 128)

    # Padded hidden units get weight 0 and bias 0, so they are exactly 0 after
    # ReLU and contribute nothing downstream.
    w0p = jnp.pad(w0.T, ((0, 0), (0, H0p - H0))).astype(jnp.bfloat16)
    b0p = jnp.pad(b0, (0, H0p - H0)).reshape(1, H0p).astype(jnp.float32)
    w1p = jnp.pad(w1.T, ((0, H0p - H0), (0, H1p - H1))).astype(jnp.bfloat16)
    b1p = jnp.pad(b1, (0, H1p - H1)).reshape(1, H1p).astype(jnp.float32)
    w2p = jnp.pad(w2.reshape(1, H1),
                  ((0, 0), (0, H1p - H1))).astype(jnp.float32)
    b2p = b2.reshape(1).astype(jnp.float32)        # SMEM scalar
    return {"w0": w0p, "b0": b0p, "w1": w1p, "b1": b1p, "w2": w2p, "b2": b2p}


# ----------------------------------------------------------------------------
# Forward: x (B, 64) f32 -> (B, 1) f32, matching the PyTorch module.
# ----------------------------------------------------------------------------
@functools.partial(jax.jit, static_argnames=("tile_b",))
def prior_discriminator_forward(prepped, x, *, tile_b=256):
    B, D_in = x.shape
    w0, b0 = prepped["w0"], prepped["b0"]          # (64, H0p) bf16, (1, H0p)
    w1, b1 = prepped["w1"], prepped["b1"]          # (H0p, H1p) bf16, (1, H1p)
    w2, b2 = prepped["w2"], prepped["b2"]          # (1, H1p) f32,  (1,)
    H0p, H1p = w0.shape[1], w1.shape[1]

    # Batch tiling: for large B use tile_b (256 fills the v6e/v7x MXU; pass
    # tile_b=128 for v5e).  Tiny batches collapse to a single 8-row tile.
    Bp8 = _round_up(max(B, 1), 8)
    if Bp8 >= tile_b:
        TILE_B = tile_b
        Bp = _round_up(B, tile_b)
    else:
        TILE_B = Bp8
        Bp = Bp8
    n_tiles = Bp // TILE_B

    xp = jnp.pad(x, ((0, Bp - B), (0, 0))).astype(jnp.bfloat16)

    flops = 2 * Bp * (D_in * H0p + H0p * H1p) + 4 * Bp * H1p
    bytes_accessed = (2 * (xp.size + w0.size + w1.size)            # bf16
                      + 4 * (b0.size + b1.size + w2.size + b2.size)  # f32
                      + 4 * Bp)                                    # output

    out = pl.pallas_call(
        _prior_disc_kernel,
        out_shape=jax.ShapeDtypeStruct((Bp, 1), jnp.float32),
        grid=(n_tiles,),
        in_specs=[
            pl.BlockSpec((TILE_B, D_in), lambda i: (i, 0)),
            # Weight index_maps are constant so the blocks stay VMEM-resident
            # across grid steps.
            pl.BlockSpec((D_in, H0p), lambda i: (0, 0)),
            pl.BlockSpec((1, H0p), lambda i: (0, 0)),
            pl.BlockSpec((H0p, H1p), lambda i: (0, 0)),
            pl.BlockSpec((1, H1p), lambda i: (0, 0)),
            pl.BlockSpec((1, H1p), lambda i: (0, 0)),
            pl.BlockSpec(memory_space=pltpu.MemorySpace.SMEM),     # b2 scalar
        ],
        out_specs=pl.BlockSpec((TILE_B, 1), lambda i: (i, 0)),
        compiler_params=pltpu.CompilerParams(
            dimension_semantics=("parallel",)),
        cost_estimate=pl.CostEstimate(
            flops=flops, transcendentals=Bp, bytes_accessed=bytes_accessed),
    )(xp, w0, b0, w1, b1, w2, b2)
    return out[:B]


# ----------------------------------------------------------------------------
# Deterministic synthetic parameters, PyTorch nn.Linear layout & init.
# ----------------------------------------------------------------------------
def init_params(key):
    def linear_init(k, out_f, in_f):
        kw, kb = jax.random.split(k)
        bound = 1.0 / (in_f ** 0.5)
        w = jax.random.uniform(kw, (out_f, in_f), minval=-bound, maxval=bound,
                               dtype=jnp.float32)
        b = jax.random.uniform(kb, (out_f,), minval=-bound, maxval=bound,
                               dtype=jnp.float32)
        return w, b

    k0, k1, k2 = jax.random.split(key, 3)
    p = {}
    p["l0_w"], p["l0_b"] = linear_init(k0, 1000, 64)
    p["l1_w"], p["l1_b"] = linear_init(k1, 200, 1000)
    p["l2_w"], p["l2_b"] = linear_init(k2, 1, 200)
    return p


def reference_forward(params, x):
    h = jnp.maximum(x @ params["l0_w"].T + params["l0_b"], 0.0)
    h = jnp.maximum(h @ params["l1_w"].T + params["l1_b"], 0.0)
    z = h @ params["l2_w"].T + params["l2_b"]
    return 1.0 / (1.0 + jnp.exp(-z))


# ----------------------------------------------------------------------------
if __name__ == "__main__":
    key = jax.random.PRNGKey(0)
    k_param, k_x = jax.random.split(key)

    B = 2                                   # module input is (B, 64)
    params = init_params(k_param)
    x = jax.random.normal(k_x, (B, 64), dtype=jnp.float32)

    # One-time weight prep (transpose + pad + bf16 cast), reused per call.
    prepped = jax.tree_util.tree_map(jax.block_until_ready,
                                     prepare_params(params))

    out = prior_discriminator_forward(prepped, x)
    jax.block_until_ready(out)

    # Light self-check against a pure-JAX f32 reference (tolerance absorbs
    # bf16 matmul operands + approx reciprocal; both are well under 1e-2 on a
    # sigmoid-bounded output).
    ref = reference_forward(params, x)
    assert out.shape == (B, 1)
    max_err = float(jnp.max(jnp.abs(out - ref)))
    if max_err > 1e-2:
        raise AssertionError(f"kernel/reference mismatch: max abs err {max_err}")

    print("KERNEL_OK")
</pallas_src>

<mosaic_0001>
module attributes {stable_mosaic.version = 11 : i64} {
  func.func @_prior_disc_kernel(%arg0: i32, %arg1: memref<8x64xbf16, #tpu.memory_space<vmem>>, %arg2: memref<64x1024xbf16, #tpu.memory_space<vmem>>, %arg3: memref<1x1024xf32, #tpu.memory_space<vmem>>, %arg4: memref<1024x256xbf16, #tpu.memory_space<vmem>>, %arg5: memref<1x256xf32, #tpu.memory_space<vmem>>, %arg6: memref<1x256xf32, #tpu.memory_space<vmem>>, %arg7: memref<1xf32, #tpu.memory_space<smem>>, %arg8: memref<8x1xf32, #tpu.memory_space<vmem>>) attributes {dimension_semantics = [#tpu.dimension_semantics<parallel>], iteration_bounds = array<i64: 1>, scalar_prefetch = 0 : i64, scratch_operands = 0 : i64, tpu.core_type = #tpu.core_type<tc>, window_params = [{transform_indices = @transform_0, window_bounds = array<i64: 8, 64>}, {pipeline_mode = #tpu.pipeline_mode<synchronous>, transform_indices = @transform_1, window_bounds = array<i64: 64, 1024>}, {pipeline_mode = #tpu.pipeline_mode<synchronous>, transform_indices = @transform_2, window_bounds = array<i64: 1, 1024>}, {pipeline_mode = #tpu.pipeline_mode<synchronous>, transform_indices = @transform_3, window_bounds = array<i64: 1024, 256>}, {pipeline_mode = #tpu.pipeline_mode<synchronous>, transform_indices = @transform_4, window_bounds = array<i64: 1, 256>}, {pipeline_mode = #tpu.pipeline_mode<synchronous>, transform_indices = @transform_5, window_bounds = array<i64: 1, 256>}, {transform_indices = @transform_6, window_bounds = array<i64: 1>}, {transform_indices = @transform_7, window_bounds = array<i64: 8, 1>}]} {
    %c0 = arith.constant 0 : index
    %c0_0 = arith.constant 0 : index
    %0 = vector.load %arg1[%c0, %c0_0] : memref<8x64xbf16, #tpu.memory_space<vmem>>, vector<8x64xbf16>
    %c0_1 = arith.constant 0 : index
    %c0_2 = arith.constant 0 : index
    %1 = vector.load %arg2[%c0_1, %c0_2] : memref<64x1024xbf16, #tpu.memory_space<vmem>>, vector<64x1024xbf16>
    %cst = arith.constant dense<0.000000e+00> : vector<8x1024xf32>
    %2 = tpu.matmul %0, %1, %cst {dimension_numbers = #tpu.dot_dimension_numbers<[1], [0], [0], [1], [0, 0, 1, 1], [], []>} : vector<8x64xbf16>, vector<64x1024xbf16>, vector<8x1024xf32> -> vector<8x1024xf32>
    %c0_3 = arith.constant 0 : index
    %c0_4 = arith.constant 0 : index
    %3 = vector.load %arg3[%c0_3, %c0_4] : memref<1x1024xf32, #tpu.memory_space<vmem>>, vector<1x1024xf32>
    %4 = vector.broadcast %3 : vector<1x1024xf32> to vector<8x1024xf32>
    %5 = arith.addf %2, %4 : vector<8x1024xf32>
    %cst_5 = arith.constant 0.000000e+00 : f32
    %6 = vector.broadcast %cst_5 : f32 to vector<8x1024xf32>
    %7 = arith.maximumf %5, %6 : vector<8x1024xf32>
    %8 = arith.truncf %7 : vector<8x1024xf32> to vector<8x1024xbf16>
    %c0_6 = arith.constant 0 : index
    %c0_7 = arith.constant 0 : index
    %9 = vector.load %arg4[%c0_6, %c0_7] : memref<1024x256xbf16, #tpu.memory_space<vmem>>, vector<1024x256xbf16>
    %cst_8 = arith.constant dense<0.000000e+00> : vector<8x256xf32>
    %10 = tpu.matmul %8, %9, %cst_8 {dimension_numbers = #tpu.dot_dimension_numbers<[1], [0], [0], [1], [0, 0, 1, 1], [], []>} : vector<8x1024xbf16>, vector<1024x256xbf16>, vector<8x256xf32> -> vector<8x256xf32>
    %c0_9 = arith.constant 0 : index
    %c0_10 = arith.constant 0 : index
    %11 = vector.load %arg5[%c0_9, %c0_10] : memref<1x256xf32, #tpu.memory_space<vmem>>, vector<1x256xf32>
    %12 = vector.broadcast %11 : vector<1x256xf32> to vector<8x256xf32>
    %13 = arith.addf %10, %12 : vector<8x256xf32>
    %cst_11 = arith.constant 0.000000e+00 : f32
    %14 = vector.broadcast %cst_11 : f32 to vector<8x256xf32>
    %15 = arith.maximumf %13, %14 : vector<8x256xf32>
    %c0_12 = arith.constant 0 : index
    %c0_13 = arith.constant 0 : index
    %16 = vector.load %arg6[%c0_12, %c0_13] : memref<1x256xf32, #tpu.memory_space<vmem>>, vector<1x256xf32>
    %17 = vector.broadcast %16 : vector<1x256xf32> to vector<8x256xf32>
    %18 = arith.mulf %15, %17 : vector<8x256xf32>
    %cst_14 = arith.constant dense<0.000000e+00> : vector<8xf32>
    %19 = vector.multi_reduction <add>, %18, %cst_14 [1] : vector<8x256xf32> to vector<8xf32>
    %20 = vector.shape_cast %19 : vector<8xf32> to vector<8x1xf32>
    %c0_15 = arith.constant 0 : index
    %21 = memref.load %arg7[%c0_15] : memref<1xf32, #tpu.memory_space<smem>>
    %22 = vector.broadcast %21 : f32 to vector<8x1xf32>
    %23 = arith.addf %20, %22 : vector<8x1xf32>
    %cst_16 = arith.constant 0.000000e+00 : f32
    %24 = vector.broadcast %cst_16 : f32 to vector<8x1xf32>
    %25 = arith.subf %24, %23 : vector<8x1xf32>
    %26 = math.exp %25 : vector<8x1xf32>
    %cst_17 = arith.constant 1.000000e+00 : f32
    %27 = vector.broadcast %cst_17 : f32 to vector<8x1xf32>
    %28 = arith.addf %27, %26 : vector<8x1xf32>
    %29 = tpu.reciprocal %28 {approx = true} : vector<8x1xf32> -> vector<8x1xf32>
    %c0_18 = arith.constant 0 : index
    %c0_19 = arith.constant 0 : index
    %30 = vector.load %arg8[%c0_18, %c0_19] : memref<8x1xf32, #tpu.memory_space<vmem>>, vector<8x1xf32>
    tpu.vector_store %arg8[%c0_18, %c0_19], %29 {strides = array<i32>} : memref<8x1xf32, #tpu.memory_space<vmem>>, vector<8x1xf32>,
    return
  }
  func.func @transform_0(%arg0: i32) -> (i32, i32) {
    %c0_i32 = arith.constant 0 : i32
    %c0_i32_0 = arith.constant 0 : i32
    return %arg0, %c0_i32 : i32, i32
  }
  func.func @transform_1(%arg0: i32) -> (i32, i32) {
    %c0_i32 = arith.constant 0 : i32
    %c0_i32_0 = arith.constant 0 : i32
    %c0_i32_1 = arith.constant 0 : i32
    return %c0_i32, %c0_i32_0 : i32, i32
  }
  func.func @transform_2(%arg0: i32) -> (i32, i32) {
    %c0_i32 = arith.constant 0 : i32
    %c0_i32_0 = arith.constant 0 : i32
    %c0_i32_1 = arith.constant 0 : i32
    return %c0_i32, %c0_i32_0 : i32, i32
  }
  func.func @transform_3(%arg0: i32) -> (i32, i32) {
    %c0_i32 = arith.constant 0 : i32
    %c0_i32_0 = arith.constant 0 : i32
    %c0_i32_1 = arith.constant 0 : i32
    return %c0_i32, %c0_i32_0 : i32, i32
  }
  func.func @transform_4(%arg0: i32) -> (i32, i32) {
    %c0_i32 = arith.constant 0 : i32
    %c0_i32_0 = arith.constant 0 : i32
    %c0_i32_1 = arith.constant 0 : i32
    return %c0_i32, %c0_i32_0 : i32, i32
  }
  func.func @transform_5(%arg0: i32) -> (i32, i32) {
    %c0_i32 = arith.constant 0 : i32
    %c0_i32_0 = arith.constant 0 : i32
    %c0_i32_1 = arith.constant 0 : i32
    return %c0_i32, %c0_i32_0 : i32, i32
  }
  func.func @transform_6(%arg0: i32) -> i32 {
    %c0_i32 = arith.constant 0 : i32
    %c0_i32_0 = arith.constant 0 : i32
    return %c0_i32 : i32
  }
  func.func @transform_7(%arg0: i32) -> (i32, i32) {
    %c0_i32 = arith.constant 0 : i32
    %c0_i32_0 = arith.constant 0 : i32
    return %arg0, %c0_i32 : i32, i32
  }
}

</mosaic_0001>

<bundles_post_ra>
// kernel: prior_discriminator_forward.1
= control target key start
LH: loop header
LB: loop body
LE: loop exit
PB: predicated region body
PF: predicated region fallthrough
CT: control target
= control target key end

     0   :  { %13 = vsyncpa [#allocation4], 0  ;;  %s2020_s0 = inlined_call_operand.vmem [shape: bf16[8,64], index: 0, kind: input, shape index: {}]   ;;  %s2021_s1 = inlined_call_operand.hbm [shape: bf16[64,1024], index: 1, kind: input, shape index: {}]   ;;  %s2022_s2 = inlined_call_operand.vmem [shape: f32[1,1024], index: 2, kind: input, shape index: {}]   ;;  %s2023_s3 = inlined_call_operand.hbm [shape: bf16[1024,256], index: 3, kind: input, shape index: {}]   ;;  %s2024_s4 = inlined_call_operand.vmem [shape: f32[1,256], index: 4, kind: input, shape index: {}]   ;;  %s2025_s5 = inlined_call_operand.vmem [shape: f32[1,256], index: 5, kind: input, shape index: {}]   ;;  %s2026_s6 = inlined_call_operand.<no memory space> [shape: f32[1], index: 6, kind: input, shape index: {}]   ;;  %s2027_s7 = inlined_call_operand.vmem [shape: f32[8,1], index: 7, kind: output, shape index: {}]  }
   0x1   :  { %14 = vsyncpa [#allocation6], 0  ;;  %s1881_s24 = smov [#allocation3]   ;;  %s1833_s28 = scalar_lea.hbm %s2021_s1, 4096 }
   0x2   :  { %s22_s25 = sshll.u32 %s1881_s24, 4  ;;  %p1834_p0 = scmp.ne.s32.totalorder %s2021_s1, %s1833_s28  ;;  %s23_s25 = int_to_ptr.vmem [resolvable:$true] %s22_s25 }
   0x3   :  { %p1837_p1 = scmp.lt.u32.totalorder %s1833_s28, %s2021_s1 }
   0x5   :  { %p1839_p2 = pnand %p1837_p1, %p1834_p0 }
   0x7   :  { %1842 = shalt.err (!%p1839_p2)
}
   0x8   :  { %s1843_s10 = scalar_lea.vmem %s23_s25, 4096  ;;  %p1848_p4 = scmp.lt.s32.totalorder %s23_s25, %s23_s25 }
   0x9   :  { %p1844_p3 = scmp.ne.s32.totalorder %s23_s25, %s1843_s10  ;;  %p1849_p5 = scmp.lt.s32.totalorder %s1843_s10, %s1843_s10 }
   0xb   :  { %p1850_p6 = por %p1849_p5, %p1848_p4 }
   0xd   :  { %p1851_p7 = pnand %p1850_p6, %p1844_p3 }
   0xf   :  { %1854 = shalt.err (!%p1851_p7)
}
  0x10   :  { %s1882_s11 = smov 512   ;;  %s1883_s12 = smov 32  }
  0x11   :  { %28 = dma.hbm_to_vmem [thread:$0]  %s2021_s1, 4096, %s23_s25, [#allocation4], %s1882_s11, %s1882_s11, %s1883_s12  }
  0x12   :  { %s1884_s15 = smov [#allocation5]   ;;  %s1855_s19 = scalar_lea.hbm %s2023_s3, 16384 }
  0x13   :  { %s36_s16 = sshll.u32 %s1884_s15, 4  ;;  %p1856_p8 = scmp.ne.s32.totalorder %s2023_s3, %s1855_s19  ;;  %s37_s16 = int_to_ptr.vmem [resolvable:$true] %s36_s16 }
  0x14   :  { %p1859_p9 = scmp.lt.u32.totalorder %s1855_s19, %s2023_s3 }
  0x16   :  { %p1861_p10 = pnand %p1859_p9, %p1856_p8 }
  0x18   :  { %1864 = shalt.err (!%p1861_p10)
}
  0x19   :  { %s1865_s24 = scalar_lea.vmem %s37_s16, 16384  ;;  %p1870_p12 = scmp.lt.s32.totalorder %s37_s16, %s37_s16 }
  0x1a   :  { %p1866_p11 = scmp.ne.s32.totalorder %s37_s16, %s1865_s24  ;;  %p1871_p13 = scmp.lt.s32.totalorder %s1865_s24, %s1865_s24 }
  0x1c   :  { %p1872_p0 = por %p1871_p13, %p1870_p12 }
  0x1e   :  { %p1873_p1 = pnand %p1872_p0, %p1866_p11 }
  0x20   :  { %1876 = shalt.err (!%p1873_p1)
}
  0x21   :  { %s1885_s1 = smov 128   ;;  %s1886_s25 = smov 8  }
  0x22   :  { %42 = dma.hbm_to_vmem [thread:$0]  %s2023_s3, 16384, %s37_s16, [#allocation6], %s1885_s1, %s1885_s1, %s1886_s25  }
  0x23   :  { %1877 = dma.done.wait [#allocation4], 4096  }
  0x24   :  { %1878 = vsyncadd [#allocation4], 4294963200 }
  0x25   :  { %1879 = dma.done.wait [#allocation6], 16384  }
  0x26   :  { %1880 = vsyncadd [#allocation6], 4294950912  ;;  %v1887_v0 = vmov 0   ;;  %v57_v1 = vld [vmem:[#allocation3] sm:$0xff]  ;;  %v58_v14 = vld [vmem:[#allocation3 + $0x8] sm:$0xff]  ;;  %vm291_vm0 = vcmask 523264  }
  0x27   :  { %327 = vmatprep.mubr.bf16.mxu0 %v1887_v0  ;;  %368 = vmatprep.mubr.bf16.mxu1 %v1887_v0  ;;  %v61_v2 = vld [vmem:[#allocation3 + $0x20] sm:$0xff]  ;;  %v62_v15 = vld [vmem:[#allocation3 + $0x28] sm:$0xff]  ;;  %v59_v25 = vld [vmem:[#allocation3 + $0x10] sm:$0xff]  ;;  %vm1446_vm1 = vcmask 7168  }
  0x28   :  { %v65_v3 = vld [vmem:[#allocation3 + $0x40] sm:$0xff]  ;;  %v1455_v4 = vcombine.high %v57_v1, %v61_v2  ;;  %v1454_v5 = vcombine.low %v57_v1, %v61_v2  ;;  %v66_v16 = vld [vmem:[#allocation3 + $0x48] sm:$0xff]  ;;  %v1457_v18 = vcombine.high %v58_v14, %v62_v15  ;;  %v1456_v19 = vcombine.low %v58_v14, %v62_v15  ;;  %v63_v26 = vld [vmem:[#allocation3 + $0x30] sm:$0xff] }
  0x29   :  { %v69_v6 = vld [vmem:[#allocation3 + $0x60] sm:$0xff]  ;;  %v70_v17 = vld [vmem:[#allocation3 + $0x68] sm:$0xff]  ;;  %v1459_v32 = vcombine.high %v59_v25, %v63_v26  ;;  %v67_v34 = vld [vmem:[#allocation3 + $0x50] sm:$0xff]  ;;  %v1458_v39 = vcombine.low %v59_v25, %v63_v26 }
  0x2a   :  { %v1463_v7 = vcombine.high %v65_v3, %v69_v6  ;;  %v73_v8 = vld [vmem:[#allocation3 + $0x80] sm:$0xff]  ;;  %295 = vmatprep.subr.bf16.mxu0 %v1455_v4  ;;  %v1462_v10 = vcombine.low %v65_v3, %v69_v6  ;;  %v1465_v20 = vcombine.high %v66_v16, %v70_v17  ;;  %v74_v22 = vld [vmem:[#allocation3 + $0x88] sm:$0xff]  ;;  %336 = vmatprep.subr.bf16.mxu1 %v1457_v18  ;;  %v71_v35 = vld [vmem:[#allocation3 + $0x70] sm:$0xff] }
  0x2b   :  { %v77_v9 = vld [vmem:[#allocation3 + $0xa0] sm:$0xff]  ;;  %296 = vmatpush1.bf16.msra.mxu0 %v1454_v5  ;;  %v78_v23 = vld [vmem:[#allocation3 + $0xa8] sm:$0xff]  ;;  %337 = vmatpush1.bf16.msra.mxu1 %v1456_v19  ;;  %v1464_v27 = vcombine.low %v66_v16, %v70_v17  ;;  %v60_v38 = vld [vmem:[#allocation3 + $0x18] sm:$0xff]  ;;  %v1467_v41 = vcombine.high %v67_v34, %v71_v35  ;;  %v1466_v47 = vcombine.low %v67_v34, %v71_v35 }
  0x2c   :  { %297 = vmatprep.subr.bf16.mxu0 %v1463_v7  ;;  %v1471_v11 = vcombine.high %v73_v8, %v77_v9  ;;  %v81_v12 = vld [vmem:[#allocation3 + $0xc0] sm:$0xff]  ;;  %v1470_v21 = vcombine.low %v73_v8, %v77_v9  ;;  %338 = vmatprep.subr.bf16.mxu1 %v1465_v20  ;;  %v1473_v28 = vcombine.high %v74_v22, %v78_v23  ;;  %v82_v29 = vld [vmem:[#allocation3 + $0xc8] sm:$0xff]  ;;  %v64_v40 = vld [vmem:[#allocation3 + $0x38] sm:$0xff] }
  0x2d   :  { %v85_v13 = vld [vmem:[#allocation3 + $0xe0] sm:$0xff]  ;;  %v86_v31 = vld [vmem:[#allocation3 + $0xe8] sm:$0xff]  ;;  %v1472_v36 = vcombine.low %v74_v22, %v78_v23  ;;  %v75_v42 = vld [vmem:[#allocation3 + $0x90] sm:$0xff]  ;;  %v1461_v45 = vcombine.high %v60_v38, %v64_v40  ;;  %v1460_v52 = vcombine.low %v60_v38, %v64_v40 }
  0x2e   :  { %v1479_v24 = vcombine.high %v81_v12, %v85_v13  ;;  %v1478_v30 = vcombine.low %v81_v12, %v85_v13  ;;  %v1957_v33 = vld [vmem:[%s2020_s0] sm:$0xf]  ;;  %v1481_v37 = vcombine.high %v82_v29, %v86_v31  ;;  %v79_v43 = vld [vmem:[#allocation3 + $0xb0] sm:$0xff]  ;;  %v1480_v44 = vcombine.low %v82_v29, %v86_v31  ;;  %v68_v46 = vld [vmem:[#allocation3 + $0x58] sm:$0xff] }
  0x2f   :  { %298 = vmatpush1.bf16.msra.mxu0 %v1462_v10  ;;  %339 = vmatpush1.bf16.msra.mxu1 %v1464_v27  ;;  %v72_v48 = vld [vmem:[#allocation3 + $0x78] sm:$0xff]  ;;  %v1475_v49 = vcombine.high %v75_v42, %v79_v43  ;;  %v83_v50 = vld [vmem:[#allocation3 + $0xd0] sm:$0xff]  ;;  %v1474_v55 = vcombine.low %v75_v42, %v79_v43  ;;  %v1654_v63 = vld [vmem:[#allocation5 + $0x204] ss:$8 sps:$4 sm:$0xff]  }
  0x30   :  { %299 = vmatprep.subr.bf16.mxu0 %v1471_v11  ;;  %340 = vmatprep.subr.bf16.mxu1 %v1473_v28  ;;  %v87_v51 = vld [vmem:[#allocation3 + $0xf0] sm:$0xff]  ;;  %v1469_v53 = vcombine.high %v68_v46, %v72_v48  ;;  %v76_v54 = vld [vmem:[#allocation3 + $0x98] sm:$0xff]  ;;  %v1468_v58 = vcombine.low %v68_v46, %v72_v48  ;;  %v1652_v3 = vld [vmem:[#allocation5 + $0x200] ss:$8 sps:$4 sm:$0xff]  }
  0x31   :  { %v80_v56 = vld [vmem:[#allocation3 + $0xb8] sm:$0xff]  ;;  %v1483_v57 = vcombine.high %v83_v50, %v87_v51  ;;  %v1482_v61 = vcombine.low %v83_v50, %v87_v51  ;;  %v1666_v7 = vld [vmem:[#allocation5 + $0x224] ss:$8 sps:$4 sm:$0xff]   ;;  %v1637_v8 = vld [vmem:[#allocation5] ss:$8 sps:$4 sm:$0xff]  }
  0x32   :  { %v1477_v59 = vcombine.high %v76_v54, %v80_v56  ;;  %v84_v60 = vld [vmem:[#allocation3 + $0xd8] sm:$0xff]  ;;  %v1476_v1 = vcombine.low %v76_v54, %v80_v56  ;;  %v1664_v10 = vld [vmem:[#allocation5 + $0x220] ss:$8 sps:$4 sm:$0xff]   ;;  %v1645_v13 = vld [vmem:[#allocation5 + $0x24] ss:$8 sps:$4 sm:$0xff]  }
  0x33   :  { %300 = vmatpush1.bf16.msra.mxu0 %v1470_v21  ;;  %341 = vmatpush1.bf16.msra.mxu1 %v1472_v36  ;;  %v88_v62 = vld [vmem:[#allocation3 + $0xf8] sm:$0xff]  ;;  %v1678_v15 = vld [vmem:[#allocation5 + $0x244] ss:$8 sps:$4 sm:$0xff]   ;;  %v1643_v16 = vld [vmem:[#allocation5 + $0x20] ss:$8 sps:$4 sm:$0xff]  }
  0x34   :  { %301 = vmatprep.subr.bf16.mxu0 %v1479_v24  ;;  %342 = vmatprep.subr.bf16.mxu1 %v1481_v37  ;;  %v1485_v2 = vcombine.high %v84_v60, %v88_v62  ;;  %v1660_v4 = vld [vmem:[#allocation5 + $0x214] ss:$8 sps:$4 sm:$0xff]   ;;  %v1484_v5 = vcombine.low %v84_v60, %v88_v62  ;;  %v1658_v6 = vld [vmem:[#allocation5 + $0x210] ss:$8 sps:$4 sm:$0xff]   ;;  %v1676_v18 = vld [vmem:[#allocation5 + $0x240] ss:$8 sps:$4 sm:$0xff]  }
  0x35   :  { %v1642_v9 = vld [vmem:[#allocation5 + $0x14] ss:$8 sps:$4 sm:$0xff]   ;;  %v1640_v11 = vld [vmem:[#allocation5 + $0x10] ss:$8 sps:$4 sm:$0xff]   ;;  %v1651_v21 = vld [vmem:[#allocation5 + $0x44] ss:$8 sps:$4 sm:$0xff]  }
  0x36   :  { %v1672_v12 = vld [vmem:[#allocation5 + $0x234] ss:$8 sps:$4 sm:$0xff]   ;;  %v1670_v14 = vld [vmem:[#allocation5 + $0x230] ss:$8 sps:$4 sm:$0xff]   ;;  %v1690_v23 = vld [vmem:[#allocation5 + $0x264] ss:$8 sps:$4 sm:$0xff]  }
  0x37   :  { %302 = vmatpush1.bf16.msra.mxu0 %v1478_v30  ;;  %343 = vmatpush1.bf16.msra.mxu1 %v1480_v44  ;;  %v1648_v17 = vld [vmem:[#allocation5 + $0x34] ss:$8 sps:$4 sm:$0xff]   ;;  %v1646_v20 = vld [vmem:[#allocation5 + $0x30] ss:$8 sps:$4 sm:$0xff]   ;;  %v1649_v24 = vld [vmem:[#allocation5 + $0x40] ss:$8 sps:$4 sm:$0xff]  }
  0x38   :  { %377 = vmatprep.subr.bf16.mxu0 %v1459_v32  ;;  %418 = vmatprep.subr.bf16.mxu1 %v1461_v45  ;;  %v1684_v19 = vld [vmem:[#allocation5 + $0x254] ss:$8 sps:$4 sm:$0xff]   ;;  %v1682_v22 = vld [vmem:[#allocation5 + $0x250] ss:$8 sps:$4 sm:$0xff]   ;;  %v1688_v26 = vld [vmem:[#allocation5 + $0x260] ss:$8 sps:$4 sm:$0xff]  }
  0x39   :  { %v1657_v25 = vld [vmem:[#allocation5 + $0x54] ss:$8 sps:$4 sm:$0xff]   ;;  %v1655_v28 = vld [vmem:[#allocation5 + $0x50] ss:$8 sps:$4 sm:$0xff]   ;;  %v1663_v29 = vld [vmem:[#allocation5 + $0x64] ss:$8 sps:$4 sm:$0xff]  }
  0x3a   :  { %1486 = vmatmul.mubr.msk.bf16.vlgmr.msra.gmra.mrb[0].mxu0 %vm291_vm0, %v1957_v33  ;;  %1487 = vmatmul.mubr.msk.bf16.vlgmr.msra.gmra.mrb[0].mxu1 %vm291_vm0, %v1957_v33  ;;  %v1696_v27 = vld [vmem:[#allocation5 + $0x274] ss:$8 sps:$4 sm:$0xff]   ;;  %v1694_v30 = vld [vmem:[#allocation5 + $0x270] ss:$8 sps:$4 sm:$0xff]   ;;  %v1702_v31 = vld [vmem:[#allocation5 + $0x284] ss:$8 sps:$4 sm:$0xff]  }
  0x3b   :  { %378 = vmatpush1.bf16.msra.mxu0 %v1458_v39  ;;  %409 = vmatprep.mubr.bf16.mxu0 %v1887_v0  ;;  %v1661_v32 = vld [vmem:[#allocation5 + $0x60] ss:$8 sps:$4 sm:$0xff]   ;;  %v1708_v35 = vld [vmem:[#allocation5 + $0x294] ss:$8 sps:$4 sm:$0xff]   ;;  %v1667_v36 = vld [vmem:[#allocation5 + $0x70] ss:$8 sps:$4 sm:$0xff]  }
  0x3c   :  { %379 = vmatprep.subr.bf16.mxu0 %v1467_v41  ;;  %419 = vmatpush1.bf16.msra.mxu1 %v1460_v52  ;;  %v1700_v34 = vld [vmem:[#allocation5 + $0x280] ss:$8 sps:$4 sm:$0xff]   ;;  %v1675_v37 = vld [vmem:[#allocation5 + $0x84] ss:$8 sps:$4 sm:$0xff]   ;;  %v1706_v38 = vld [vmem:[#allocation5 + $0x290] ss:$8 sps:$4 sm:$0xff]  }
  0x3d   :  { %450 = vmatprep.mubr.bf16.mxu1 %v1887_v0  ;;  %420 = vmatprep.subr.bf16.mxu1 %v1469_v53  ;;  %v1639_v0 = vld [vmem:[#allocation5 + $0x4] ss:$8 sps:$4 sm:$0xff]   ;;  %v1673_v39 = vld [vmem:[#allocation5 + $0x80] ss:$8 sps:$4 sm:$0xff]   ;;  %v1681_v40 = vld [vmem:[#allocation5 + $0x94] ss:$8 sps:$4 sm:$0xff]  }
  0x3e   :  { %v1679_v41 = vld [vmem:[#allocation5 + $0x90] ss:$8 sps:$4 sm:$0xff]   ;;  %v1687_v42 = vld [vmem:[#allocation5 + $0xa4] ss:$8 sps:$4 sm:$0xff]   ;;  %v1685_v43 = vld [vmem:[#allocation5 + $0xa0] ss:$8 sps:$4 sm:$0xff]  }
  0x3f   :  { %380 = vmatpush1.bf16.msra.mxu0 %v1466_v47  ;;  %v1693_v44 = vld [vmem:[#allocation5 + $0xb4] ss:$8 sps:$4 sm:$0xff]   ;;  %v1691_v45 = vld [vmem:[#allocation5 + $0xb0] ss:$8 sps:$4 sm:$0xff]   ;;  %v1699_v46 = vld [vmem:[#allocation5 + $0xc4] ss:$8 sps:$4 sm:$0xff]  }
  0x40   :  { %381 = vmatprep.subr.bf16.mxu0 %v1475_v49  ;;  %421 = vmatpush1.bf16.msra.mxu1 %v1468_v58  ;;  %v1697_v47 = vld [vmem:[#allocation5 + $0xc0] ss:$8 sps:$4 sm:$0xff]   ;;  %v1705_v48 = vld [vmem:[#allocation5 + $0xd4] ss:$8 sps:$4 sm:$0xff]   ;;  %v1703_v49 = vld [vmem:[#allocation5 + $0xd0] ss:$8 sps:$4 sm:$0xff]  }
  0x41   :  { %422 = vmatprep.subr.bf16.mxu1 %v1477_v59  ;;  %v1711_v50 = vld [vmem:[#allocation5 + $0xe4] ss:$8 sps:$4 sm:$0xff]   ;;  %v1709_v52 = vld [vmem:[#allocation5 + $0xe0] ss:$8 sps:$4 sm:$0xff]   ;;  %v1717_v54 = vld [vmem:[#allocation5 + $0xf4] ss:$8 sps:$4 sm:$0xff]  }
  0x42   :  { %v1714_v51 = vld [vmem:[#allocation5 + $0x2a4] ss:$8 sps:$4 sm:$0xff]   ;;  %v1712_v53 = vld [vmem:[#allocation5 + $0x2a0] ss:$8 sps:$4 sm:$0xff]   ;;  %v1715_v56 = vld [vmem:[#allocation5 + $0xf0] ss:$8 sps:$4 sm:$0xff]  }
  0x43   :  { %382 = vmatpush1.bf16.msra.mxu0 %v1474_v55  ;;  %v1720_v55 = vld [vmem:[#allocation5 + $0x2b4] ss:$8 sps:$4 sm:$0xff]   ;;  %v1723_v58 = vld [vmem:[#allocation5 + $0x104] ss:$8 sps:$4 sm:$0xff]   ;;  %v1724_v60 = vld [vmem:[#allocation5 + $0x2c0] ss:$8 sps:$4 sm:$0xff]  }
  0x44   :  { %383 = vmatprep.subr.bf16.mxu0 %v1483_v57  ;;  %423 = vmatpush1.bf16.msra.mxu1 %v1476_v1  ;;  %v1718_v57 = vld [vmem:[#allocation5 + $0x2b0] ss:$8 sps:$4 sm:$0xff]   ;;  %v1726_v59 = vld [vmem:[#allocation5 + $0x2c4] ss:$8 sps:$4 sm:$0xff]   ;;  %v1732_v62 = vld [vmem:[#allocation5 + $0x2d4] ss:$8 sps:$4 sm:$0xff]  }
  0x45   :  { %424 = vmatprep.subr.bf16.mxu1 %v1485_v2  ;;  %v1736_v1 = vld [vmem:[#allocation5 + $0x2e0] ss:$8 sps:$4 sm:$0xff]   ;;  %v1744_v2 = vld [vmem:[#allocation5 + $0x2f4] ss:$8 sps:$4 sm:$0xff]  }
  0x47   :  { %384 = vmatpush1.bf16.msra.mxu0 %v1482_v61  ;;  %v1730_v61 = vld [vmem:[#allocation5 + $0x2d0] ss:$8 sps:$4 sm:$0xff]  }
  0x48   :  { %1337 = vmatprep.subr.bf16.mxu0 %v1654_v63  ;;  %425 = vmatpush1.bf16.msra.mxu1 %v1484_v5  ;;  %v1738_v63 = vld [vmem:[#allocation5 + $0x2e4] ss:$8 sps:$4 sm:$0xff]   ;;  %v91_v5 = vlaneseq }
  0x49   :  { %1255 = vmatprep.subr.bf16.mxu1 %v1639_v0 }
  0x4a   :  { %1488 = vmatmul.mubr.msk.bf16.vlgmr.msra.gmra.mrb[4].mxu0 %vm291_vm0, %v1957_v33  ;;  %v1969_v0 = vshrl.u32 %v91_v5, 7 }
  0x4b   :  { %1338 = vmatpush1.bf16.msra.mxu0 %v1652_v3  ;;  %1489 = vmatmul.mubr.msk.bf16.vlgmr.msra.gmra.mrb[4].mxu1 %vm291_vm0, %v1957_v33  ;;  %v1669_v33 = vld [vmem:[#allocation5 + $0x74] ss:$8 sps:$4 sm:$0xff]   ;;  %v1742_v3 = vld [vmem:[#allocation5 + $0x2f0] ss:$8 sps:$4 sm:$0xff]  }
  0x4c   :  { %1339 = vmatprep.subr.bf16.mxu0 %v1660_v4  ;;  %1256 = vmatpush1.bf16.msra.mxu1 %v1637_v8  ;;  %v1750_v4 = vld [vmem:[#allocation5 + $0x304] ss:$8 sps:$4 sm:$0xff]   ;;  %v1980_v8 = vsub.s32 1, %v1969_v0 }
  0x4d   :  { %1257 = vmatprep.subr.bf16.mxu1 %v1642_v9 }
  0x4f   :  { %1340 = vmatpush1.bf16.msra.mxu0 %v1658_v6  ;;  %v1972_v6 = vsub.s32 0, %v1969_v0 }
  0x50   :  { %1341 = vmatprep.subr.bf16.mxu0 %v1666_v7  ;;  %1258 = vmatpush1.bf16.msra.mxu1 %v1640_v11  ;;  %v1977_v7 = vld [vmem:[%s2022_s2] sm:$0xff] }
  0x51   :  { %1259 = vmatprep.subr.bf16.mxu1 %v1645_v13  ;;  %v94_v9 = vrot.slane %v1977_v7, %v1972_v6 }
  0x53   :  { %1342 = vmatpush1.bf16.msra.mxu0 %v1664_v10  ;;  %v98_v10 = vrot.slane %v1977_v7, %v1980_v8 }
  0x54   :  { %1343 = vmatprep.subr.bf16.mxu0 %v1672_v12  ;;  %1260 = vmatpush1.bf16.msra.mxu1 %v1643_v16  ;;  %v105_v12 = vsub.s32 3, %v1969_v0 }
  0x55   :  { %1261 = vmatprep.subr.bf16.mxu1 %v1648_v17 }
  0x57   :  { %1344 = vmatpush1.bf16.msra.mxu0 %v1670_v14 }
  0x58   :  { %1345 = vmatprep.subr.bf16.mxu0 %v1678_v15  ;;  %1262 = vmatpush1.bf16.msra.mxu1 %v1646_v20  ;;  %v106_v20 = vrot.slane %v1977_v7, %v105_v12  ;;  %v1768_v12 = vld [vmem:[#allocation5 + $0x334] ss:$8 sps:$4 sm:$0xff]  }
  0x59   :  { %1263 = vmatprep.subr.bf16.mxu1 %v1651_v21 }
  0x5b   :  { %1346 = vmatpush1.bf16.msra.mxu0 %v1676_v18 }
  0x5c   :  { %1347 = vmatprep.subr.bf16.mxu0 %v1684_v19  ;;  %1264 = vmatpush1.bf16.msra.mxu1 %v1649_v24 }
  0x5d   :  { %1265 = vmatprep.subr.bf16.mxu1 %v1657_v25  ;;  %v1729_v25 = vld [vmem:[#allocation5 + $0x114] ss:$8 sps:$4 sm:$0xff]  }
  0x5f   :  { %1348 = vmatpush1.bf16.msra.mxu0 %v1682_v22 }
  0x60   :  { %1349 = vmatprep.subr.bf16.mxu0 %v1690_v23  ;;  %1266 = vmatpush1.bf16.msra.mxu1 %v1655_v28  ;;  %v1721_v23 = vld [vmem:[#allocation5 + $0x100] ss:$8 sps:$4 sm:$0xff]  }
  0x61   :  { %1267 = vmatprep.subr.bf16.mxu1 %v1663_v29  ;;  %v109_v29 = vsub.s32 4, %v1969_v0 }
  0x63   :  { %1350 = vmatpush1.bf16.msra.mxu0 %v1688_v26 }
  0x64   :  { %1351 = vmatprep.subr.bf16.mxu0 %v1696_v27  ;;  %1268 = vmatpush1.bf16.msra.mxu1 %v1661_v32  ;;  %v113_v32 = vsub.s32 5, %v1969_v0 }
  0x65   :  { %1269 = vmatprep.subr.bf16.mxu1 %v1669_v33 }
  0x67   :  { %1352 = vmatpush1.bf16.msra.mxu0 %v1694_v30 }
  0x68   :  { %1353 = vmatprep.subr.bf16.mxu0 %v1702_v31  ;;  %1270 = vmatpush1.bf16.msra.mxu1 %v1667_v36  ;;  %v1727_v31 = vld [vmem:[#allocation5 + $0x110] ss:$8 sps:$4 sm:$0xff]   ;;  %v110_v36 = vrot.slane %v1977_v7, %v109_v29  ;;  %v1792_v29 = vld [vmem:[#allocation5 + $0x374] ss:$8 sps:$4 sm:$0xff]  }
  0x69   :  { %1271 = vmatprep.subr.bf16.mxu1 %v1675_v37  ;;  %v1733_v37 = vld [vmem:[#allocation5 + $0x120] ss:$8 sps:$4 sm:$0xff]  }
  0x6b   :  { %1354 = vmatpush1.bf16.msra.mxu0 %v1700_v34  ;;  %v1735_v34 = vld [vmem:[#allocation5 + $0x124] ss:$8 sps:$4 sm:$0xff]  }
  0x6c   :  { %1355 = vmatprep.subr.bf16.mxu0 %v1708_v35  ;;  %1272 = vmatpush1.bf16.msra.mxu1 %v1673_v39  ;;  %v1741_v39 = vld [vmem:[#allocation5 + $0x134] ss:$8 sps:$4 sm:$0xff]  }
  0x6d   :  { %1273 = vmatprep.subr.bf16.mxu1 %v1681_v40 }
  0x6f   :  { %1356 = vmatpush1.bf16.msra.mxu0 %v1706_v38  ;;  %v114_v38 = vrot.slane %v1977_v7, %v113_v32  ;;  %v1795_v32 = vld [vmem:[#allocation5 + $0x1c4] ss:$8 sps:$4 sm:$0xff]  }
  0x70   :  { %1274 = vmatpush1.bf16.msra.mxu1 %v1679_v41  ;;  %1357 = vmatprep.subr.bf16.mxu0 %v1714_v51  ;;  %v121_v41 = vsub.s32 7, %v1969_v0 }
  0x71   :  { %1275 = vmatprep.subr.bf16.mxu1 %v1687_v42 }
  0x72   :  { %v122_v51 = vrot.slane %v1977_v7, %v121_v41  ;;  %v1802_v41 = vld [vmem:[#allocation5 + $0x390] ss:$8 sps:$4 sm:$0xff]  }
  0x73   :  { %1358 = vmatpush1.bf16.msra.mxu0 %v1712_v53  ;;  %v1745_v53 = vld [vmem:[#allocation5 + $0x140] ss:$8 sps:$4 sm:$0xff]  }
  0x74   :  { %1276 = vmatpush1.bf16.msra.mxu1 %v1685_v43  ;;  %1359 = vmatprep.subr.bf16.mxu0 %v1720_v55 }
  0x75   :  { %1277 = vmatprep.subr.bf16.mxu1 %v1693_v44 }
  0x77   :  { %1360 = vmatpush1.bf16.msra.mxu0 %v1718_v57  ;;  %v1753_v57 = vld [vmem:[#allocation5 + $0x154] ss:$8 sps:$4 sm:$0xff]  }
  0x78   :  { %1278 = vmatpush1.bf16.msra.mxu1 %v1691_v45  ;;  %1361 = vmatprep.subr.bf16.mxu0 %v1726_v59 }
  0x79   :  { %1279 = vmatprep.subr.bf16.mxu1 %v1699_v46  ;;  %v1739_v46 = vld [vmem:[#allocation5 + $0x130] ss:$8 sps:$4 sm:$0xff]  }
  0x7b   :  { %1362 = vmatpush1.bf16.msra.mxu0 %v1724_v60 }
  0x7c   :  { %1280 = vmatpush1.bf16.msra.mxu1 %v1697_v47  ;;  %1363 = vmatprep.subr.bf16.mxu0 %v1732_v62 }
  0x7d   :  { %1281 = vmatprep.subr.bf16.mxu1 %v1705_v48 }
  0x7f   :  { %1364 = vmatpush1.bf16.msra.mxu0 %v1730_v61 }
  0x80   :  { %1282 = vmatpush1.bf16.msra.mxu1 %v1703_v49  ;;  %1365 = vmatprep.subr.bf16.mxu0 %v1738_v63  ;;  %v1747_v49 = vld [vmem:[#allocation5 + $0x144] ss:$8 sps:$4 sm:$0xff]   ;;  %v1751_v63 = vld [vmem:[#allocation5 + $0x150] ss:$8 sps:$4 sm:$0xff]  }
  0x81   :  { %1283 = vmatprep.subr.bf16.mxu1 %v1711_v50 }
  0x83   :  { %1366 = vmatpush1.bf16.msra.mxu0 %v1736_v1  ;;  %v1754_v1 = vld [vmem:[#allocation5 + $0x310] ss:$8 sps:$4 sm:$0xff]  }
  0x84   :  { %1284 = vmatpush1.bf16.msra.mxu1 %v1709_v52  ;;  %1367 = vmatprep.subr.bf16.mxu0 %v1744_v2 }
  0x85   :  { %1285 = vmatprep.subr.bf16.mxu1 %v1717_v54  ;;  %v1748_v54 = vld [vmem:[#allocation5 + $0x300] ss:$8 sps:$4 sm:$0xff]  }
  0x87   :  { %1368 = vmatpush1.bf16.msra.mxu0 %v1742_v3  ;;  %v1759_v3 = vld [vmem:[#allocation5 + $0x164] ss:$8 sps:$4 sm:$0xff]  }
  0x88   :  { %1286 = vmatpush1.bf16.msra.mxu1 %v1715_v56  ;;  %1378 = vmatprep.subr.bf16.mxu0 %v1750_v4  ;;  %v1762_v4 = vld [vmem:[#allocation5 + $0x324] ss:$8 sps:$4 sm:$0xff]  }
  0x89   :  { %1296 = vmatprep.subr.bf16.mxu1 %v1723_v58  ;;  %v1756_v58 = vld [vmem:[#allocation5 + $0x314] ss:$8 sps:$4 sm:$0xff]  }
 0x10d   :  { %v329_v11 = vpop.f32.mrb[0].mxu0  ;;  %v1988_v24 = vpop.f32.mrb[0].mxu1 }
 0x10e   :  { %v330_v13 = vadd.f32 %v329_v11, %v94_v9  ;;  %v331_v14 = vpop.f32.mrb[1].mxu0  ;;  %v372_v26 = vpop.f32.mrb[1].mxu1  ;;  %v1757_v9 = vld [vmem:[#allocation5 + $0x160] ss:$8 sps:$4 sm:$0xff]   ;;  %v1765_v11 = vld [vmem:[#allocation5 + $0x174] ss:$8 sps:$4 sm:$0xff]  }
 0x10f   :  { %v332_v15 = vadd.f32 %v331_v14, %v98_v10  ;;  %v333_v16 = vpop.f32.mrb[2].mxu0  ;;  %v373_v27 = vadd.f32 %v372_v26, %v106_v20  ;;  %v374_v28 = vpop.f32.mrb[2].mxu1  ;;  %v1760_v10 = vld [vmem:[#allocation5 + $0x320] ss:$8 sps:$4 sm:$0xff]   ;;  %v1766_v14 = vld [vmem:[#allocation5 + $0x330] ss:$8 sps:$4 sm:$0xff]  }
 0x110   :  { %v459_v17 = vmax.f32 %v330_v13, 0.0  ;;  %v334_v18 = vpop.f32.mrb[3].mxu0  ;;  %v375_v30 = vpop.f32.mrb[3].mxu1  ;;  %v1763_v13 = vld [vmem:[#allocation5 + $0x170] ss:$8 sps:$4 sm:$0xff]  }
 0x111   :  { %v460_v19 = vmax.f32 %v332_v15, 0.0  ;;  %v462_v33 = vmax.f32 %v373_v27, 0.0  ;;  %v1771_v15 = vld [vmem:[#allocation5 + $0x184] ss:$8 sps:$4 sm:$0xff]   ;;  %v1772_v18 = vld [vmem:[#allocation5 + $0x340] ss:$8 sps:$4 sm:$0xff]  }
 0x112   :  { %v467_v21 = vpack.c.bf16 %v459_v17, %v459_v17  ;;  %v1774_v16 = vld [vmem:[#allocation5 + $0x344] ss:$8 sps:$4 sm:$0xff]   ;;  %v1769_v17 = vld [vmem:[#allocation5 + $0x180] ss:$8 sps:$4 sm:$0xff]   ;;  %v1780_v20 = vld [vmem:[#allocation5 + $0x354] ss:$8 sps:$4 sm:$0xff]  }
 0x113   :  { %v468_v22 = vpack.c.bf16 %v460_v19, %v460_v19  ;;  %v470_v35 = vpack.c.bf16 %v462_v33, %v462_v33  ;;  %v1777_v19 = vld [vmem:[#allocation5 + $0x194] ss:$8 sps:$4 sm:$0xff]   ;;  %v1781_v26 = vld [vmem:[#allocation5 + $0x1a0] ss:$8 sps:$4 sm:$0xff]   ;;  %v1787_v30 = vld [vmem:[#allocation5 + $0x1b0] ss:$8 sps:$4 sm:$0xff]  }
 0x114   :  { %v1784_v27 = vld [vmem:[#allocation5 + $0x360] ss:$8 sps:$4 sm:$0xff]   ;;  %v1789_v28 = vld [vmem:[#allocation5 + $0x1b4] ss:$8 sps:$4 sm:$0xff]   ;;  %v1798_v33 = vld [vmem:[#allocation5 + $0x384] ss:$8 sps:$4 sm:$0xff]  }
 0x115   :  { %1287 = vmatprep.mubr.bf16.mxu1 %v468_v22  ;;  %v1778_v22 = vld [vmem:[#allocation5 + $0x350] ss:$8 sps:$4 sm:$0xff]  }
 0x116   :  { %1288 = vmatmul.mubr.bf16.vlgmr.msra.gmra.mrb[8].mxu1 %v467_v21  ;;  %v1775_v21 = vld [vmem:[#allocation5 + $0x190] ss:$8 sps:$4 sm:$0xff]  }
 0x117   :  { %1297 = vmatpush1.bf16.msra.mxu1 %v1721_v23  ;;  %1328 = vmatprep.mubr.bf16.mxu1 %v470_v35  ;;  %v1783_v23 = vld [vmem:[#allocation5 + $0x1a4] ss:$8 sps:$4 sm:$0xff]   ;;  %v1793_v35 = vld [vmem:[#allocation5 + $0x1c0] ss:$8 sps:$4 sm:$0xff]  }
 0x118   :  { %1298 = vmatprep.subr.bf16.mxu1 %v1729_v25  ;;  %v1786_v25 = vld [vmem:[#allocation5 + $0x364] ss:$8 sps:$4 sm:$0xff]  }
 0x11b   :  { %1299 = vmatpush1.bf16.msra.mxu1 %v1727_v31  ;;  %v1790_v31 = vld [vmem:[#allocation5 + $0x370] ss:$8 sps:$4 sm:$0xff]  }
 0x11c   :  { %1300 = vmatprep.subr.bf16.mxu1 %v1735_v34  ;;  %v101_v34 = vsub.s32 2, %v1969_v0 }
 0x11d   :  { %v411_v40 = vpop.f32.mrb[4].mxu0 }
 0x11e   :  { %v412_v42 = vadd.f32 %v411_v40, %v110_v36  ;;  %v413_v43 = vpop.f32.mrb[5].mxu0  ;;  %v1996_v55 = vpop.f32.mrb[4].mxu1  ;;  %v1796_v36 = vld [vmem:[#allocation5 + $0x380] ss:$8 sps:$4 sm:$0xff]   ;;  %v1799_v40 = vld [vmem:[#allocation5 + $0x1d0] ss:$8 sps:$4 sm:$0xff]  }
 0x11f   :  { %v414_v44 = vadd.f32 %v413_v43, %v114_v38  ;;  %1301 = vmatpush1.bf16.msra.mxu1 %v1733_v37  ;;  %v415_v45 = vpop.f32.mrb[6].mxu0  ;;  %v454_v59 = vpop.f32.mrb[5].mxu1  ;;  %v1801_v37 = vld [vmem:[#allocation5 + $0x1d4] ss:$8 sps:$4 sm:$0xff]   ;;  %v1810_v43 = vld [vmem:[#allocation5 + $0x3a4] ss:$8 sps:$4 sm:$0xff]  }
 0x120   :  { %v463_v47 = vmax.f32 %v412_v42, 0.0  ;;  %v416_v48 = vpop.f32.mrb[7].mxu0  ;;  %1302 = vmatprep.subr.bf16.mxu1 %v1741_v39  ;;  %v455_v60 = vadd.f32 %v454_v59, %v122_v51  ;;  %v456_v61 = vpop.f32.mrb[6].mxu1  ;;  %v1804_v38 = vld [vmem:[#allocation5 + $0x394] ss:$8 sps:$4 sm:$0xff]   ;;  %v102_v39 = vrot.slane %v1977_v7, %v101_v34 }
 0x121   :  { %v464_v50 = vmax.f32 %v414_v44, 0.0  ;;  %v457_v62 = vpop.f32.mrb[7].mxu1  ;;  %v1807_v42 = vld [vmem:[#allocation5 + $0x1e4] ss:$8 sps:$4 sm:$0xff]   ;;  %v1805_v45 = vld [vmem:[#allocation5 + $0x1e0] ss:$8 sps:$4 sm:$0xff]  }
 0x122   :  { %v471_v56 = vpack.c.bf16 %v463_v47, %v463_v47  ;;  %v466_v2 = vmax.f32 %v455_v60, 0.0  ;;  %v371_v44 = vadd.f32 %v1988_v24, %v102_v39  ;;  %v1813_v47 = vld [vmem:[#allocation5 + $0x1f4] ss:$8 sps:$4 sm:$0xff]   ;;  %v1814_v51 = vld [vmem:[#allocation5 + $0x3b0] ss:$8 sps:$4 sm:$0xff]  }
 0x123   :  { %v472_v52 = vpack.c.bf16 %v464_v50, %v464_v50  ;;  %1303 = vmatpush1.bf16.msra.mxu1 %v1739_v46  ;;  %v1808_v46 = vld [vmem:[#allocation5 + $0x3a0] ss:$8 sps:$4 sm:$0xff]   ;;  %v1816_v48 = vld [vmem:[#allocation5 + $0x3b4] ss:$8 sps:$4 sm:$0xff]   ;;  %v1811_v50 = vld [vmem:[#allocation5 + $0x1f0] ss:$8 sps:$4 sm:$0xff]  }
 0x124   :  { %1304 = vmatprep.subr.bf16.mxu1 %v1747_v49  ;;  %v474_v5 = vpack.c.bf16 %v466_v2, %v466_v2  ;;  %v461_v49 = vmax.f32 %v371_v44, 0.0  ;;  %v1817_v24 = vld [vmem:[#allocation5 + $0x3c0] ss:$8 sps:$4 sm:$0xff]   ;;  %v1825_v59 = vld [vmem:[#allocation5 + $0x3e4] ss:$8 sps:$4 sm:$0xff]  }
 0x125   :  { %1369 = vmatprep.mubr.bf16.mxu0 %v472_v52  ;;  %v1819_v52 = vld [vmem:[#allocation5 + $0x3c4] ss:$8 sps:$4 sm:$0xff]   ;;  %v1823_v60 = vld [vmem:[#allocation5 + $0x3e0] ss:$8 sps:$4 sm:$0xff]   ;;  %v1828_v62 = vld [vmem:[#allocation5 + $0x3f4] ss:$8 sps:$4 sm:$0xff]  }
 0x126   :  { %1370 = vmatmul.mubr.bf16.vlgmr.msra.gmra.mrb[8].mxu0 %v471_v56  ;;  %v1822_v56 = vld [vmem:[#allocation5 + $0x3d4] ss:$8 sps:$4 sm:$0xff]  }
 0x127   :  { %1305 = vmatpush1.bf16.msra.mxu1 %v1745_v53  ;;  %1379 = vmatpush1.bf16.msra.mxu0 %v1748_v54  ;;  %v469_v53 = vpack.c.bf16 %v461_v49, %v461_v49  ;;  %v117_v54 = vsub.s32 6, %v1969_v0 }
 0x128   :  { %1306 = vmatprep.subr.bf16.mxu1 %v1753_v57  ;;  %1380 = vmatprep.subr.bf16.mxu0 %v1756_v58  ;;  %v1820_v57 = vld [vmem:[#allocation5 + $0x3d0] ss:$8 sps:$4 sm:$0xff]  }
 0x129   :  { %1410 = vmatprep.mubr.bf16.mxu0 %v474_v5  ;;  %v118_v58 = vrot.slane %v1977_v7, %v117_v54  ;;  %v603_v7 = vld [vmem:[%s2024_s4] sm:$0x3] }
 0x12b   :  { %1307 = vmatpush1.bf16.msra.mxu1 %v1751_v63  ;;  %1381 = vmatpush1.bf16.msra.mxu0 %v1754_v1  ;;  %v453_v61 = vadd.f32 %v1996_v55, %v118_v58  ;;  %v1826_v63 = vld [vmem:[#allocation5 + $0x3f0] ss:$8 sps:$4 sm:$0xff]   ;;  %v612_v55 = vrot.slane %v603_v7, %v1980_v8 }
 0x12c   :  { %1308 = vmatprep.subr.bf16.mxu1 %v1759_v3  ;;  %1382 = vmatprep.subr.bf16.mxu0 %v1762_v4 }
 0x12d   :  { %v465_v1 = vmax.f32 %v453_v61, 0.0 }
 0x12f   :  { %1309 = vmatpush1.bf16.msra.mxu1 %v1757_v9  ;;  %1383 = vmatpush1.bf16.msra.mxu0 %v1760_v10  ;;  %v473_v0 = vpack.c.bf16 %v465_v1, %v465_v1  ;;  %v608_v9 = vrot.slane %v603_v7, %v1972_v6  ;;  %v1421_v10 = vld [vmem:[%s2025_s5] sm:$0x3] }
 0x130   :  { %1310 = vmatprep.subr.bf16.mxu1 %v1765_v11  ;;  %1384 = vmatprep.subr.bf16.mxu0 %v1768_v12 }
 0x133   :  { %1311 = vmatpush1.bf16.msra.mxu1 %v1763_v13  ;;  %1385 = vmatpush1.bf16.msra.mxu0 %v1766_v14 }
 0x134   :  { %1312 = vmatprep.subr.bf16.mxu1 %v1771_v15  ;;  %1386 = vmatprep.subr.bf16.mxu0 %v1774_v16  ;;  %v1426_v16 = vrot.slane %v1421_v10, %v1972_v6 }
 0x137   :  { %1313 = vmatpush1.bf16.msra.mxu1 %v1769_v17  ;;  %1387 = vmatpush1.bf16.msra.mxu0 %v1772_v18 }
 0x138   :  { %1314 = vmatprep.subr.bf16.mxu1 %v1777_v19  ;;  %1388 = vmatprep.subr.bf16.mxu0 %v1780_v20  ;;  %v1430_v19 = vrot.slane %v1421_v10, %v1980_v8 }
 0x13b   :  { %1315 = vmatpush1.bf16.msra.mxu1 %v1775_v21  ;;  %1389 = vmatpush1.bf16.msra.mxu0 %v1778_v22 }
 0x13c   :  { %1316 = vmatprep.subr.bf16.mxu1 %v1783_v23  ;;  %1390 = vmatprep.subr.bf16.mxu0 %v1786_v25 }
 0x13f   :  { %1317 = vmatpush1.bf16.msra.mxu1 %v1781_v26  ;;  %1391 = vmatpush1.bf16.msra.mxu0 %v1784_v27  ;;  %v1439_v27 = vstv %s2026_s6 }
 0x140   :  { %1318 = vmatprep.subr.bf16.mxu1 %v1789_v28  ;;  %1392 = vmatprep.subr.bf16.mxu0 %v1792_v29 }
 0x143   :  { %1319 = vmatpush1.bf16.msra.mxu1 %v1787_v30  ;;  %1393 = vmatpush1.bf16.msra.mxu0 %v1790_v31 }
 0x144   :  { %1320 = vmatprep.subr.bf16.mxu1 %v1795_v32  ;;  %1394 = vmatprep.subr.bf16.mxu0 %v1798_v33 }
 0x147   :  { %1321 = vmatpush1.bf16.msra.mxu1 %v1793_v35  ;;  %1395 = vmatpush1.bf16.msra.mxu0 %v1796_v36 }
 0x148   :  { %1322 = vmatprep.subr.bf16.mxu1 %v1801_v37  ;;  %1396 = vmatprep.subr.bf16.mxu0 %v1804_v38 }
 0x14b   :  { %1323 = vmatpush1.bf16.msra.mxu1 %v1799_v40  ;;  %1397 = vmatpush1.bf16.msra.mxu0 %v1802_v41 }
 0x14c   :  { %1324 = vmatprep.subr.bf16.mxu1 %v1807_v42  ;;  %1398 = vmatprep.subr.bf16.mxu0 %v1810_v43 }
 0x14f   :  { %1325 = vmatpush1.bf16.msra.mxu1 %v1805_v45  ;;  %1399 = vmatpush1.bf16.msra.mxu0 %v1808_v46 }
 0x150   :  { %1326 = vmatprep.subr.bf16.mxu1 %v1813_v47  ;;  %1400 = vmatprep.subr.bf16.mxu0 %v1816_v48 }
 0x153   :  { %1327 = vmatpush1.bf16.msra.mxu1 %v1811_v50  ;;  %1401 = vmatpush1.bf16.msra.mxu0 %v1814_v51 }
 0x154   :  { %1402 = vmatprep.subr.bf16.mxu0 %v1819_v52 }
 0x156   :  { %1329 = vmatmul.mubr.bf16.vlgmr.msra.gmra.mrb[8].mxu1 %v469_v53 }
 0x157   :  { %1403 = vmatpush1.bf16.msra.mxu0 %v1817_v24 }
 0x158   :  { %1404 = vmatprep.subr.bf16.mxu0 %v1822_v56 }
 0x15b   :  { %1405 = vmatpush1.bf16.msra.mxu0 %v1820_v57 }
 0x15c   :  { %1406 = vmatprep.subr.bf16.mxu0 %v1825_v59 }
 0x15f   :  { %1407 = vmatpush1.bf16.msra.mxu0 %v1823_v60 }
 0x160   :  { %1408 = vmatprep.subr.bf16.mxu0 %v1828_v62 }
 0x163   :  { %1409 = vmatpush1.bf16.msra.mxu0 %v1826_v63 }
 0x166   :  { %1411 = vmatmul.mubr.bf16.vlgmr.msra.gmra.mrb[8].mxu0 %v473_v0 }
 0x229   :  { %v1330_v2 = vpop.f32.mrb[8].mxu1 }
 0x22a   :  { %v1332_v3 = vpop.f32.mrb[9].mxu1  ;;  %v1618_v11 = vadd.f32 %v1330_v2, %v608_v9 }
 0x22b   :  { %v1334_v4 = vpop.f32.mrb[10].mxu1  ;;  %v1620_v12 = vadd.f32 %v1332_v3, %v612_v55 }
 0x22c   :  { %v1335_v5 = vpop.f32.mrb[11].mxu1 }
 0x239   :  { %v1412_v13 = vpop.f32.mrb[8].mxu0 }
 0x23a   :  { %v1619_v14 = vadd.f32 %v1618_v11, %v1412_v13  ;;  %v1414_v15 = vpop.f32.mrb[9].mxu0 }
 0x23b   :  { %v1621_v17 = vadd.f32 %v1620_v12, %v1414_v15  ;;  %v1416_v18 = vpop.f32.mrb[10].mxu0 }
 0x23c   :  { %v1419_v20 = vmax.f32 %v1619_v14, 0.0  ;;  %v1417_v21 = vpop.f32.mrb[11].mxu0 }
 0x23d   :  { %v1420_v22 = vmax.f32 %v1621_v17, 0.0 }
 0x23e   :  { %v1433_v23 = vmul.f32 %v1426_v16, %v1419_v20 }
 0x23f   :  { %v1434_v25 = vmul.f32 %v1430_v19, %v1420_v22 }
 0x241   :  { %v1435_v26 = vadd.f32 %v1434_v25, %v1433_v23 }
 0x243   :  { %1436 = vadd.xlane.f32.xlu0 %v1435_v26 }
 0x2d0   :  { %v1437_v28 = vpop.xlane.xlu0 %1436 }
 0x2d1   :  { %v1440_v29 = vadd.f32 %v1439_v27, %v1437_v28 }
 0x2d3   :  { %v1441_v30 = vsub.f32 0.0, %v1440_v29 }
 0x2d5   :  { %v1442_v31 = vmul.f32 1.442695, %v1441_v30 }
 0x2d7   :  { %1829 = vpow2.f32 %v1442_v31 }
 0x2e1   :  { %v1830_v6 = vpop.eup %1829 }
 0x2e2   :  { %v1444_v32 = vadd.f32 1.0, %v1830_v6 }
 0x2e4   :  { %1831 = vrcp.f32 %v1444_v32 }
 0x2ee   :  { %v1832_v8 = vpop.eup %1831 }
 0x2ef   :  { %1447 = vst.msk [vmem:[%s2027_s7] sm:$0xff] %vm1446_vm1, %v1832_v8 }
 0x2f0   :  { %1452 = vsyncpa [#allocation4], 1 }
 0x2f1   :  { %1453 = vsyncpa [#allocation6], 1 }

</bundles_post_ra>
